<compile_context>
chip_gen: v7x
topology: tpu7x:2x2x1
jax: 0.10.0
libtpu: 0.0.40
codegen_flags: <defaults>
</compile_context>

<pallas_src>
import functools

import jax
import jax.numpy as jnp
from jax import lax
from jax.experimental import pallas as pl
from jax.experimental.pallas import tpu as pltpu


def _embed_kernel(ids_ref, wte_hbm, wpe_ref, out_ref, gbuf, sems, *,
                  block_tokens, seq_len, vocab_size):
    """One grid step = one (batch b, token-block j) tile of T tokens.

    ids_ref : SMEM, [B*S] int32        (scalar-prefetched, flattened token ids)
    wte_hbm : HBM (pl.ANY), [V, H]     (word table, row-gathered via DMA)
    wpe_ref : VMEM, [S, H]             (position table slice, resident: index (0,0))
    out_ref : VMEM, [1, T, H]          (output tile, pipelined writeback)
    gbuf    : VMEM scratch, [2, T, H]  (double-buffered gathered word rows)
    sems    : DMA semaphores, [2]      (one shared semaphore per buffer slot)
    """
    T = block_tokens
    b = pl.program_id(0)              # batch index ("parallel")
    j = pl.program_id(1)              # token-block index ("arbitrary": carried gbuf/sems)
    nj = pl.num_programs(1)
    slot = j & 1                      # buffer slot for the current block

    def start_gather(block_idx, gslot):
        # Issue T independent row DMAs, all signaling the SAME semaphore sems[gslot].
        base = b * seq_len + block_idx * T

        def body(t, carry):
            tok = ids_ref[base + t]
            # Guard out-of-range ids (documented clamp; PyTorch would raise).
            tok = jnp.clip(tok, 0, vocab_size - 1)
            pltpu.make_async_copy(
                wte_hbm.at[pl.ds(tok, 1), :],
                gbuf.at[gslot, pl.ds(t, 1), :],
                sems.at[gslot],
            ).start()
            return carry

        lax.fori_loop(0, T, body, 0, unroll=min(8, T))

    # First block of each batch: nothing was prefetched for it -> gather now.
    @pl.when(j == 0)
    def _():
        start_gather(0, slot)         # slot == 0 when j == 0

    # Combined wait: one descriptor covering all T row copies (T*H elements)
    # started on sems[slot] for the current block.
    pltpu.make_async_copy(
        wte_hbm.at[pl.ds(0, T), :],   # only total size matters for the wait
        gbuf.at[slot],
        sems.at[slot],
    ).wait()

    # Prefetch the NEXT block of the SAME batch into the other slot; it runs
    # concurrently with the add/store below and with Pallas's output writeback.
    @pl.when(j + 1 < nj)
    def _():
        start_gather(j + 1, 1 - slot)

    # Contiguous position slice + dense (T, H) store. Dropout: identity (eval mode).
    base_pos = pl.multiple_of(j * T, T)
    out_ref[0] = (gbuf[slot] + wpe_ref[pl.ds(base_pos, T), :]).astype(out_ref.dtype)


def _choose_block_tokens(seq_len, cap=256):
    """Largest power-of-two-scaled multiple of 8 that divides seq_len (capped)."""
    t = cap
    while t >= 8:
        if seq_len % t == 0:
            return t
        t //= 2
    return None


def gpt_embeddings_forward(input_ids, word_emb, pos_emb, *, block_tokens=None,
                           block_cap=256):
    """Pallas equivalent of GPTEmbeddings.forward (eval mode)."""
    B, S = input_ids.shape
    V, H = word_emb.shape
    L, _ = pos_emb.shape
    assert S <= L, f"seq_len: {S}, max_length: {L}"

    T = block_tokens if block_tokens is not None else _choose_block_tokens(S, cap=block_cap)
    assert T is not None, "seq_len must be a multiple of 8 for this kernel"
    assert S % T == 0 and T % 8 == 0
    assert V >= T, "vocab_size must be >= token tile (combined-wait descriptor)"

    ids = input_ids.reshape(-1).astype(jnp.int32)   # 1D -> compact SMEM padding
    wpe = pos_emb[:S]                               # only the rows this call uses

    kernel = functools.partial(_embed_kernel, block_tokens=T, seq_len=S, vocab_size=V)

    out = pl.pallas_call(
        kernel,
        out_shape=jax.ShapeDtypeStruct((B, S, H), word_emb.dtype),
        grid_spec=pltpu.PrefetchScalarGridSpec(
            num_scalar_prefetch=1,                   # flattened input_ids -> SMEM
            grid=(B, S // T),
            in_specs=[
                # word table stays in HBM; rows are DMA-gathered inside the kernel
                pl.BlockSpec(memory_space=pl.ANY),
                # full position slice, VMEM-resident (index map constant -> fetched once)
                pl.BlockSpec((S, H), lambda b, j, ids: (0, 0)),
            ],
            # lane/sublane-dense output tile, pipelined writeback
            out_specs=pl.BlockSpec((1, T, H), lambda b, j, ids: (b, j, 0)),
            scratch_shapes=[
                pltpu.VMEM((2, T, H), word_emb.dtype),  # double-buffered gathered rows
                pltpu.SemaphoreType.DMA((2,)),          # one shared sem per buffer slot
            ],
        ),
        compiler_params=pltpu.CompilerParams(
            # batch tiles independent -> megacore sharding on v7x; token-block axis
            # carries gbuf/sems state across steps -> must be "arbitrary".
            dimension_semantics=("parallel", "arbitrary"),
        ),
    )(ids, word_emb, wpe)
    return out


def _reference(input_ids, word_emb, pos_emb):
    S = input_ids.shape[1]
    return word_emb[input_ids] + pos_emb[:S][None, :, :]


if __name__ == "__main__":
    key = jax.random.PRNGKey(0)

    # --- Test 1: small config, single token block per batch (NJ = 1). ---
    VOCAB, HIDDEN, MAX_LENGTH, B, S = 64, 128, 16, 2, 8
    k_ids, k_wte, k_wpe, key = jax.random.split(key, 4)
    word_emb = jax.random.normal(k_wte, (VOCAB, HIDDEN), dtype=jnp.float32)
    pos_emb = jax.random.normal(k_wpe, (MAX_LENGTH, HIDDEN), dtype=jnp.float32)
    input_ids = jax.random.randint(k_ids, (B, S), 0, VOCAB, dtype=jnp.int32)

    out = jax.block_until_ready(gpt_embeddings_forward(input_ids, word_emb, pos_emb))
    ref = _reference(input_ids, word_emb, pos_emb)
    assert out.shape == (B, S, HIDDEN)
    assert jnp.allclose(out, ref, atol=1e-6), "mismatch vs reference (test 1)"

    # --- Test 2: multiple token blocks per batch (NJ = 4) -> exercises the
    # combined-wait + cross-block double-buffering path and batch-boundary reset.
    VOCAB2, HIDDEN2, MAX_LENGTH2, B2, S2 = 128, 128, 48, 2, 32
    k_ids2, k_wte2, k_wpe2, key = jax.random.split(key, 4)
    word_emb2 = jax.random.normal(k_wte2, (VOCAB2, HIDDEN2), dtype=jnp.float32)
    pos_emb2 = jax.random.normal(k_wpe2, (MAX_LENGTH2, HIDDEN2), dtype=jnp.float32)
    input_ids2 = jax.random.randint(k_ids2, (B2, S2), 0, VOCAB2, dtype=jnp.int32)

    out2 = jax.block_until_ready(
        gpt_embeddings_forward(input_ids2, word_emb2, pos_emb2, block_tokens=8))
    ref2 = _reference(input_ids2, word_emb2, pos_emb2)
    assert out2.shape == (B2, S2, HIDDEN2)
    assert jnp.allclose(out2, ref2, atol=1e-6), "mismatch vs reference (test 2)"

    print("KERNEL_OK")
</pallas_src>

<mosaic_0001>
module attributes {stable_mosaic.version = 11 : i64} {
  func.func @_embed_kernel(%arg0: i32, %arg1: i32, %arg2: memref<16xi32, #tpu.memory_space<smem>>, %arg3: memref<64x128xf32, #tpu.memory_space<any>>, %arg4: memref<8x128xf32, #tpu.memory_space<vmem>>, %arg5: memref<1x8x128xf32, #tpu.memory_space<vmem>>, %arg6: memref<2x8x128xf32, #tpu.memory_space<vmem>>, %arg7: memref<2x!tpu.dma_semaphore, #tpu.memory_space<semaphore_mem>>) attributes {dimension_semantics = [#tpu.dimension_semantics<parallel>, #tpu.dimension_semantics<arbitrary>], iteration_bounds = array<i64: 2, 1>, scalar_prefetch = 1 : i64, scratch_operands = 2 : i64, tpu.core_type = #tpu.core_type<tc>, window_params = [{}, {pipeline_mode = #tpu.pipeline_mode<synchronous>, transform_indices = @transform_1, window_bounds = array<i64: 8, 128>}, {transform_indices = @transform_2, window_bounds = array<i64: 1, 8, 128>}]} {
    %c1_i32 = arith.constant 1 : i32
    %0 = arith.andi %arg1, %c1_i32 : i32
    %c0_i32 = arith.constant 0 : i32
    %1 = arith.cmpi eq, %arg1, %c0_i32 : i32
    %2 = arith.extui %1 : i1 to i32
    %c0_i32_0 = arith.constant 0 : i32
    %3 = arith.cmpi ne, %2, %c0_i32_0 : i32
    scf.if %3 {
      %c8_i32_13 = arith.constant 8 : i32
      %24 = arith.muli %arg0, %c8_i32_13 : i32
      %c0_i32_14 = arith.constant 0 : i32
      %25 = arith.addi %24, %c0_i32_14 : i32
      %c0_i32_15 = arith.constant 0 : i32
      %26 = arith.addi %25, %c0_i32_15 : i32
      %27 = arith.index_cast %26 : i32 to index
      %28 = memref.load %arg2[%27] : memref<16xi32, #tpu.memory_space<smem>>
      %c0_i32_16 = arith.constant 0 : i32
      %c63_i32 = arith.constant 63 : i32
      %29 = arith.maxsi %c0_i32_16, %28 : i32
      %30 = arith.minsi %c63_i32, %29 : i32
      %c0_i32_17 = arith.constant 0 : i32
      %31 = tpu.memref_slice %arg3[%30, %c0_i32_17] : memref<64x128xf32, #tpu.memory_space<any>> -> memref<1x128xf32, #tpu.memory_space<any>>
      %c0_i32_18 = arith.constant 0 : i32
      %32 = tpu.memref_slice %arg6[%0, %c0_i32_15, %c0_i32_18] : memref<2x8x128xf32, #tpu.memory_space<vmem>> -> memref<1x1x128xf32, #tpu.memory_space<vmem>>
      %33 = tpu.memref_squeeze %32 : memref<1x1x128xf32, #tpu.memory_space<vmem>> -> memref<1x128xf32, #tpu.memory_space<vmem>>
      %34 = tpu.memref_slice %arg7[%0] : memref<2x!tpu.dma_semaphore, #tpu.memory_space<semaphore_mem>> -> memref<1x!tpu.dma_semaphore, #tpu.memory_space<semaphore_mem>>
      %35 = tpu.memref_squeeze %34 : memref<1x!tpu.dma_semaphore, #tpu.memory_space<semaphore_mem>> -> memref<!tpu.dma_semaphore, #tpu.memory_space<semaphore_mem>>
      tpu.enqueue_dma source(%31 : memref<1x128xf32, #tpu.memory_space<any>>) target(%33 : memref<1x128xf32, #tpu.memory_space<vmem>>) target_semaphore(%35 : memref<!tpu.dma_semaphore, #tpu.memory_space<semaphore_mem>>)
      %c1_i32_19 = arith.constant 1 : i32
      %36 = arith.addi %25, %c1_i32_19 : i32
      %37 = arith.index_cast %36 : i32 to index
      %38 = memref.load %arg2[%37] : memref<16xi32, #tpu.memory_space<smem>>
      %c0_i32_20 = arith.constant 0 : i32
      %c63_i32_21 = arith.constant 63 : i32
      %39 = arith.maxsi %c0_i32_20, %38 : i32
      %40 = arith.minsi %c63_i32_21, %39 : i32
      %c0_i32_22 = arith.constant 0 : i32
      %41 = tpu.memref_slice %arg3[%40, %c0_i32_22] : memref<64x128xf32, #tpu.memory_space<any>> -> memref<1x128xf32, #tpu.memory_space<any>>
      %c0_i32_23 = arith.constant 0 : i32
      %42 = tpu.memref_slice %arg6[%0, %c1_i32_19, %c0_i32_23] : memref<2x8x128xf32, #tpu.memory_space<vmem>> -> memref<1x1x128xf32, #tpu.memory_space<vmem>>
      %43 = tpu.memref_squeeze %42 : memref<1x1x128xf32, #tpu.memory_space<vmem>> -> memref<1x128xf32, #tpu.memory_space<vmem>>
      %44 = tpu.memref_slice %arg7[%0] : memref<2x!tpu.dma_semaphore, #tpu.memory_space<semaphore_mem>> -> memref<1x!tpu.dma_semaphore, #tpu.memory_space<semaphore_mem>>
      %45 = tpu.memref_squeeze %44 : memref<1x!tpu.dma_semaphore, #tpu.memory_space<semaphore_mem>> -> memref<!tpu.dma_semaphore, #tpu.memory_space<semaphore_mem>>
      tpu.enqueue_dma source(%41 : memref<1x128xf32, #tpu.memory_space<any>>) target(%43 : memref<1x128xf32, #tpu.memory_space<vmem>>) target_semaphore(%45 : memref<!tpu.dma_semaphore, #tpu.memory_space<semaphore_mem>>)
      %c2_i32 = arith.constant 2 : i32
      %46 = arith.addi %25, %c2_i32 : i32
      %47 = arith.index_cast %46 : i32 to index
      %48 = memref.load %arg2[%47] : memref<16xi32, #tpu.memory_space<smem>>
      %c0_i32_24 = arith.constant 0 : i32
      %c63_i32_25 = arith.constant 63 : i32
      %49 = arith.maxsi %c0_i32_24, %48 : i32
      %50 = arith.minsi %c63_i32_25, %49 : i32
      %c0_i32_26 = arith.constant 0 : i32
      %51 = tpu.memref_slice %arg3[%50, %c0_i32_26] : memref<64x128xf32, #tpu.memory_space<any>> -> memref<1x128xf32, #tpu.memory_space<any>>
      %c0_i32_27 = arith.constant 0 : i32
      %52 = tpu.memref_slice %arg6[%0, %c2_i32, %c0_i32_27] : memref<2x8x128xf32, #tpu.memory_space<vmem>> -> memref<1x1x128xf32, #tpu.memory_space<vmem>>
      %53 = tpu.memref_squeeze %52 : memref<1x1x128xf32, #tpu.memory_space<vmem>> -> memref<1x128xf32, #tpu.memory_space<vmem>>
      %54 = tpu.memref_slice %arg7[%0] : memref<2x!tpu.dma_semaphore, #tpu.memory_space<semaphore_mem>> -> memref<1x!tpu.dma_semaphore, #tpu.memory_space<semaphore_mem>>
      %55 = tpu.memref_squeeze %54 : memref<1x!tpu.dma_semaphore, #tpu.memory_space<semaphore_mem>> -> memref<!tpu.dma_semaphore, #tpu.memory_space<semaphore_mem>>
      tpu.enqueue_dma source(%51 : memref<1x128xf32, #tpu.memory_space<any>>) target(%53 : memref<1x128xf32, #tpu.memory_space<vmem>>) target_semaphore(%55 : memref<!tpu.dma_semaphore, #tpu.memory_space<semaphore_mem>>)
      %c3_i32 = arith.constant 3 : i32
      %56 = arith.addi %25, %c3_i32 : i32
      %57 = arith.index_cast %56 : i32 to index
      %58 = memref.load %arg2[%57] : memref<16xi32, #tpu.memory_space<smem>>
      %c0_i32_28 = arith.constant 0 : i32
      %c63_i32_29 = arith.constant 63 : i32
      %59 = arith.maxsi %c0_i32_28, %58 : i32
      %60 = arith.minsi %c63_i32_29, %59 : i32
      %c0_i32_30 = arith.constant 0 : i32
      %61 = tpu.memref_slice %arg3[%60, %c0_i32_30] : memref<64x128xf32, #tpu.memory_space<any>> -> memref<1x128xf32, #tpu.memory_space<any>>
      %c0_i32_31 = arith.constant 0 : i32
      %62 = tpu.memref_slice %arg6[%0, %c3_i32, %c0_i32_31] : memref<2x8x128xf32, #tpu.memory_space<vmem>> -> memref<1x1x128xf32, #tpu.memory_space<vmem>>
      %63 = tpu.memref_squeeze %62 : memref<1x1x128xf32, #tpu.memory_space<vmem>> -> memref<1x128xf32, #tpu.memory_space<vmem>>
      %64 = tpu.memref_slice %arg7[%0] : memref<2x!tpu.dma_semaphore, #tpu.memory_space<semaphore_mem>> -> memref<1x!tpu.dma_semaphore, #tpu.memory_space<semaphore_mem>>
      %65 = tpu.memref_squeeze %64 : memref<1x!tpu.dma_semaphore, #tpu.memory_space<semaphore_mem>> -> memref<!tpu.dma_semaphore, #tpu.memory_space<semaphore_mem>>
      tpu.enqueue_dma source(%61 : memref<1x128xf32, #tpu.memory_space<any>>) target(%63 : memref<1x128xf32, #tpu.memory_space<vmem>>) target_semaphore(%65 : memref<!tpu.dma_semaphore, #tpu.memory_space<semaphore_mem>>)
      %c4_i32 = arith.constant 4 : i32
      %66 = arith.addi %25, %c4_i32 : i32
      %67 = arith.index_cast %66 : i32 to index
      %68 = memref.load %arg2[%67] : memref<16xi32, #tpu.memory_space<smem>>
      %c0_i32_32 = arith.constant 0 : i32
      %c63_i32_33 = arith.constant 63 : i32
      %69 = arith.maxsi %c0_i32_32, %68 : i32
      %70 = arith.minsi %c63_i32_33, %69 : i32
      %c0_i32_34 = arith.constant 0 : i32
      %71 = tpu.memref_slice %arg3[%70, %c0_i32_34] : memref<64x128xf32, #tpu.memory_space<any>> -> memref<1x128xf32, #tpu.memory_space<any>>
      %c0_i32_35 = arith.constant 0 : i32
      %72 = tpu.memref_slice %arg6[%0, %c4_i32, %c0_i32_35] : memref<2x8x128xf32, #tpu.memory_space<vmem>> -> memref<1x1x128xf32, #tpu.memory_space<vmem>>
      %73 = tpu.memref_squeeze %72 : memref<1x1x128xf32, #tpu.memory_space<vmem>> -> memref<1x128xf32, #tpu.memory_space<vmem>>
      %74 = tpu.memref_slice %arg7[%0] : memref<2x!tpu.dma_semaphore, #tpu.memory_space<semaphore_mem>> -> memref<1x!tpu.dma_semaphore, #tpu.memory_space<semaphore_mem>>
      %75 = tpu.memref_squeeze %74 : memref<1x!tpu.dma_semaphore, #tpu.memory_space<semaphore_mem>> -> memref<!tpu.dma_semaphore, #tpu.memory_space<semaphore_mem>>
      tpu.enqueue_dma source(%71 : memref<1x128xf32, #tpu.memory_space<any>>) target(%73 : memref<1x128xf32, #tpu.memory_space<vmem>>) target_semaphore(%75 : memref<!tpu.dma_semaphore, #tpu.memory_space<semaphore_mem>>)
      %c5_i32 = arith.constant 5 : i32
      %76 = arith.addi %25, %c5_i32 : i32
      %77 = arith.index_cast %76 : i32 to index
      %78 = memref.load %arg2[%77] : memref<16xi32, #tpu.memory_space<smem>>
      %c0_i32_36 = arith.constant 0 : i32
      %c63_i32_37 = arith.constant 63 : i32
      %79 = arith.maxsi %c0_i32_36, %78 : i32
      %80 = arith.minsi %c63_i32_37, %79 : i32
      %c0_i32_38 = arith.constant 0 : i32
      %81 = tpu.memref_slice %arg3[%80, %c0_i32_38] : memref<64x128xf32, #tpu.memory_space<any>> -> memref<1x128xf32, #tpu.memory_space<any>>
      %c0_i32_39 = arith.constant 0 : i32
      %82 = tpu.memref_slice %arg6[%0, %c5_i32, %c0_i32_39] : memref<2x8x128xf32, #tpu.memory_space<vmem>> -> memref<1x1x128xf32, #tpu.memory_space<vmem>>
      %83 = tpu.memref_squeeze %82 : memref<1x1x128xf32, #tpu.memory_space<vmem>> -> memref<1x128xf32, #tpu.memory_space<vmem>>
      %84 = tpu.memref_slice %arg7[%0] : memref<2x!tpu.dma_semaphore, #tpu.memory_space<semaphore_mem>> -> memref<1x!tpu.dma_semaphore, #tpu.memory_space<semaphore_mem>>
      %85 = tpu.memref_squeeze %84 : memref<1x!tpu.dma_semaphore, #tpu.memory_space<semaphore_mem>> -> memref<!tpu.dma_semaphore, #tpu.memory_space<semaphore_mem>>
      tpu.enqueue_dma source(%81 : memref<1x128xf32, #tpu.memory_space<any>>) target(%83 : memref<1x128xf32, #tpu.memory_space<vmem>>) target_semaphore(%85 : memref<!tpu.dma_semaphore, #tpu.memory_space<semaphore_mem>>)
      %c6_i32 = arith.constant 6 : i32
      %86 = arith.addi %25, %c6_i32 : i32
      %87 = arith.index_cast %86 : i32 to index
      %88 = memref.load %arg2[%87] : memref<16xi32, #tpu.memory_space<smem>>
      %c0_i32_40 = arith.constant 0 : i32
      %c63_i32_41 = arith.constant 63 : i32
      %89 = arith.maxsi %c0_i32_40, %88 : i32
      %90 = arith.minsi %c63_i32_41, %89 : i32
      %c0_i32_42 = arith.constant 0 : i32
      %91 = tpu.memref_slice %arg3[%90, %c0_i32_42] : memref<64x128xf32, #tpu.memory_space<any>> -> memref<1x128xf32, #tpu.memory_space<any>>
      %c0_i32_43 = arith.constant 0 : i32
      %92 = tpu.memref_slice %arg6[%0, %c6_i32, %c0_i32_43] : memref<2x8x128xf32, #tpu.memory_space<vmem>> -> memref<1x1x128xf32, #tpu.memory_space<vmem>>
      %93 = tpu.memref_squeeze %92 : memref<1x1x128xf32, #tpu.memory_space<vmem>> -> memref<1x128xf32, #tpu.memory_space<vmem>>
      %94 = tpu.memref_slice %arg7[%0] : memref<2x!tpu.dma_semaphore, #tpu.memory_space<semaphore_mem>> -> memref<1x!tpu.dma_semaphore, #tpu.memory_space<semaphore_mem>>
      %95 = tpu.memref_squeeze %94 : memref<1x!tpu.dma_semaphore, #tpu.memory_space<semaphore_mem>> -> memref<!tpu.dma_semaphore, #tpu.memory_space<semaphore_mem>>
      tpu.enqueue_dma source(%91 : memref<1x128xf32, #tpu.memory_space<any>>) target(%93 : memref<1x128xf32, #tpu.memory_space<vmem>>) target_semaphore(%95 : memref<!tpu.dma_semaphore, #tpu.memory_space<semaphore_mem>>)
      %c7_i32 = arith.constant 7 : i32
      %96 = arith.addi %25, %c7_i32 : i32
      %97 = arith.index_cast %96 : i32 to index
      %98 = memref.load %arg2[%97] : memref<16xi32, #tpu.memory_space<smem>>
      %c0_i32_44 = arith.constant 0 : i32
      %c63_i32_45 = arith.constant 63 : i32
      %99 = arith.maxsi %c0_i32_44, %98 : i32
      %100 = arith.minsi %c63_i32_45, %99 : i32
      %c0_i32_46 = arith.constant 0 : i32
      %101 = tpu.memref_slice %arg3[%100, %c0_i32_46] : memref<64x128xf32, #tpu.memory_space<any>> -> memref<1x128xf32, #tpu.memory_space<any>>
      %c0_i32_47 = arith.constant 0 : i32
      %102 = tpu.memref_slice %arg6[%0, %c7_i32, %c0_i32_47] : memref<2x8x128xf32, #tpu.memory_space<vmem>> -> memref<1x1x128xf32, #tpu.memory_space<vmem>>
      %103 = tpu.memref_squeeze %102 : memref<1x1x128xf32, #tpu.memory_space<vmem>> -> memref<1x128xf32, #tpu.memory_space<vmem>>
      %104 = tpu.memref_slice %arg7[%0] : memref<2x!tpu.dma_semaphore, #tpu.memory_space<semaphore_mem>> -> memref<1x!tpu.dma_semaphore, #tpu.memory_space<semaphore_mem>>
      %105 = tpu.memref_squeeze %104 : memref<1x!tpu.dma_semaphore, #tpu.memory_space<semaphore_mem>> -> memref<!tpu.dma_semaphore, #tpu.memory_space<semaphore_mem>>
      tpu.enqueue_dma source(%101 : memref<1x128xf32, #tpu.memory_space<any>>) target(%103 : memref<1x128xf32, #tpu.memory_space<vmem>>) target_semaphore(%105 : memref<!tpu.dma_semaphore, #tpu.memory_space<semaphore_mem>>)
      %c8_i32_48 = arith.constant 8 : i32
    } else {
    }
    %c0_i32_1 = arith.constant 0 : i32
    %c0_i32_2 = arith.constant 0 : i32
    %4 = tpu.memref_slice %arg3[%c0_i32_1, %c0_i32_2] : memref<64x128xf32, #tpu.memory_space<any>> -> memref<8x128xf32, #tpu.memory_space<any>>
    %c0_i32_3 = arith.constant 0 : i32
    %c0_i32_4 = arith.constant 0 : i32
    %5 = tpu.memref_slice %arg6[%0, %c0_i32_3, %c0_i32_4] : memref<2x8x128xf32, #tpu.memory_space<vmem>> -> memref<1x8x128xf32, #tpu.memory_space<vmem>>
    %6 = tpu.memref_squeeze %5 : memref<1x8x128xf32, #tpu.memory_space<vmem>> -> memref<8x128xf32, #tpu.memory_space<vmem>>
    %7 = tpu.memref_slice %arg7[%0] : memref<2x!tpu.dma_semaphore, #tpu.memory_space<semaphore_mem>> -> memref<1x!tpu.dma_semaphore, #tpu.memory_space<semaphore_mem>>
    %8 = tpu.memref_squeeze %7 : memref<1x!tpu.dma_semaphore, #tpu.memory_space<semaphore_mem>> -> memref<!tpu.dma_semaphore, #tpu.memory_space<semaphore_mem>>
    tpu.wait_dma2 semaphore(%8 : memref<!tpu.dma_semaphore, #tpu.memory_space<semaphore_mem>>) src(%4 : memref<8x128xf32, #tpu.memory_space<any>>) dst(%6 : memref<8x128xf32, #tpu.memory_space<vmem>>)
    %c1_i32_5 = arith.constant 1 : i32
    %9 = arith.addi %arg1, %c1_i32_5 : i32
    %c1_i32_6 = arith.constant 1 : i32
    %10 = arith.cmpi slt, %9, %c1_i32_6 : i32
    %11 = arith.extui %10 : i1 to i32
    %c0_i32_7 = arith.constant 0 : i32
    %12 = arith.cmpi ne, %11, %c0_i32_7 : i32
    scf.if %12 {
      %c1_i32_13 = arith.constant 1 : i32
      %24 = arith.addi %arg1, %c1_i32_13 : i32
      %c1_i32_14 = arith.constant 1 : i32
      %25 = arith.subi %c1_i32_14, %0 : i32
      %c8_i32_15 = arith.constant 8 : i32
      %26 = arith.muli %arg0, %c8_i32_15 : i32
      %c8_i32_16 = arith.constant 8 : i32
      %27 = arith.muli %24, %c8_i32_16 : i32
      %28 = arith.addi %26, %27 : i32
      %c0_i32_17 = arith.constant 0 : i32
      %29 = arith.addi %28, %c0_i32_17 : i32
      %30 = arith.index_cast %29 : i32 to index
      %31 = memref.load %arg2[%30] : memref<16xi32, #tpu.memory_space<smem>>
      %c0_i32_18 = arith.constant 0 : i32
      %c63_i32 = arith.constant 63 : i32
      %32 = arith.maxsi %c0_i32_18, %31 : i32
      %33 = arith.minsi %c63_i32, %32 : i32
      %c0_i32_19 = arith.constant 0 : i32
      %34 = tpu.memref_slice %arg3[%33, %c0_i32_19] : memref<64x128xf32, #tpu.memory_space<any>> -> memref<1x128xf32, #tpu.memory_space<any>>
      %c0_i32_20 = arith.constant 0 : i32
      %35 = tpu.memref_slice %arg6[%25, %c0_i32_17, %c0_i32_20] : memref<2x8x128xf32, #tpu.memory_space<vmem>> -> memref<1x1x128xf32, #tpu.memory_space<vmem>>
      %36 = tpu.memref_squeeze %35 : memref<1x1x128xf32, #tpu.memory_space<vmem>> -> memref<1x128xf32, #tpu.memory_space<vmem>>
      %37 = tpu.memref_slice %arg7[%25] : memref<2x!tpu.dma_semaphore, #tpu.memory_space<semaphore_mem>> -> memref<1x!tpu.dma_semaphore, #tpu.memory_space<semaphore_mem>>
      %38 = tpu.memref_squeeze %37 : memref<1x!tpu.dma_semaphore, #tpu.memory_space<semaphore_mem>> -> memref<!tpu.dma_semaphore, #tpu.memory_space<semaphore_mem>>
      tpu.enqueue_dma source(%34 : memref<1x128xf32, #tpu.memory_space<any>>) target(%36 : memref<1x128xf32, #tpu.memory_space<vmem>>) target_semaphore(%38 : memref<!tpu.dma_semaphore, #tpu.memory_space<semaphore_mem>>)
      %c1_i32_21 = arith.constant 1 : i32
      %39 = arith.addi %28, %c1_i32_21 : i32
      %40 = arith.index_cast %39 : i32 to index
      %41 = memref.load %arg2[%40] : memref<16xi32, #tpu.memory_space<smem>>
      %c0_i32_22 = arith.constant 0 : i32
      %c63_i32_23 = arith.constant 63 : i32
      %42 = arith.maxsi %c0_i32_22, %41 : i32
      %43 = arith.minsi %c63_i32_23, %42 : i32
      %c0_i32_24 = arith.constant 0 : i32
      %44 = tpu.memref_slice %arg3[%43, %c0_i32_24] : memref<64x128xf32, #tpu.memory_space<any>> -> memref<1x128xf32, #tpu.memory_space<any>>
      %c0_i32_25 = arith.constant 0 : i32
      %45 = tpu.memref_slice %arg6[%25, %c1_i32_21, %c0_i32_25] : memref<2x8x128xf32, #tpu.memory_space<vmem>> -> memref<1x1x128xf32, #tpu.memory_space<vmem>>
      %46 = tpu.memref_squeeze %45 : memref<1x1x128xf32, #tpu.memory_space<vmem>> -> memref<1x128xf32, #tpu.memory_space<vmem>>
      %47 = tpu.memref_slice %arg7[%25] : memref<2x!tpu.dma_semaphore, #tpu.memory_space<semaphore_mem>> -> memref<1x!tpu.dma_semaphore, #tpu.memory_space<semaphore_mem>>
      %48 = tpu.memref_squeeze %47 : memref<1x!tpu.dma_semaphore, #tpu.memory_space<semaphore_mem>> -> memref<!tpu.dma_semaphore, #tpu.memory_space<semaphore_mem>>
      tpu.enqueue_dma source(%44 : memref<1x128xf32, #tpu.memory_space<any>>) target(%46 : memref<1x128xf32, #tpu.memory_space<vmem>>) target_semaphore(%48 : memref<!tpu.dma_semaphore, #tpu.memory_space<semaphore_mem>>)
      %c2_i32 = arith.constant 2 : i32
      %49 = arith.addi %28, %c2_i32 : i32
      %50 = arith.index_cast %49 : i32 to index
      %51 = memref.load %arg2[%50] : memref<16xi32, #tpu.memory_space<smem>>
      %c0_i32_26 = arith.constant 0 : i32
      %c63_i32_27 = arith.constant 63 : i32
      %52 = arith.maxsi %c0_i32_26, %51 : i32
      %53 = arith.minsi %c63_i32_27, %52 : i32
      %c0_i32_28 = arith.constant 0 : i32
      %54 = tpu.memref_slice %arg3[%53, %c0_i32_28] : memref<64x128xf32, #tpu.memory_space<any>> -> memref<1x128xf32, #tpu.memory_space<any>>
      %c0_i32_29 = arith.constant 0 : i32
      %55 = tpu.memref_slice %arg6[%25, %c2_i32, %c0_i32_29] : memref<2x8x128xf32, #tpu.memory_space<vmem>> -> memref<1x1x128xf32, #tpu.memory_space<vmem>>
      %56 = tpu.memref_squeeze %55 : memref<1x1x128xf32, #tpu.memory_space<vmem>> -> memref<1x128xf32, #tpu.memory_space<vmem>>
      %57 = tpu.memref_slice %arg7[%25] : memref<2x!tpu.dma_semaphore, #tpu.memory_space<semaphore_mem>> -> memref<1x!tpu.dma_semaphore, #tpu.memory_space<semaphore_mem>>
      %58 = tpu.memref_squeeze %57 : memref<1x!tpu.dma_semaphore, #tpu.memory_space<semaphore_mem>> -> memref<!tpu.dma_semaphore, #tpu.memory_space<semaphore_mem>>
      tpu.enqueue_dma source(%54 : memref<1x128xf32, #tpu.memory_space<any>>) target(%56 : memref<1x128xf32, #tpu.memory_space<vmem>>) target_semaphore(%58 : memref<!tpu.dma_semaphore, #tpu.memory_space<semaphore_mem>>)
      %c3_i32 = arith.constant 3 : i32
      %59 = arith.addi %28, %c3_i32 : i32
      %60 = arith.index_cast %59 : i32 to index
      %61 = memref.load %arg2[%60] : memref<16xi32, #tpu.memory_space<smem>>
      %c0_i32_30 = arith.constant 0 : i32
      %c63_i32_31 = arith.constant 63 : i32
      %62 = arith.maxsi %c0_i32_30, %61 : i32
      %63 = arith.minsi %c63_i32_31, %62 : i32
      %c0_i32_32 = arith.constant 0 : i32
      %64 = tpu.memref_slice %arg3[%63, %c0_i32_32] : memref<64x128xf32, #tpu.memory_space<any>> -> memref<1x128xf32, #tpu.memory_space<any>>
      %c0_i32_33 = arith.constant 0 : i32
      %65 = tpu.memref_slice %arg6[%25, %c3_i32, %c0_i32_33] : memref<2x8x128xf32, #tpu.memory_space<vmem>> -> memref<1x1x128xf32, #tpu.memory_space<vmem>>
      %66 = tpu.memref_squeeze %65 : memref<1x1x128xf32, #tpu.memory_space<vmem>> -> memref<1x128xf32, #tpu.memory_space<vmem>>
      %67 = tpu.memref_slice %arg7[%25] : memref<2x!tpu.dma_semaphore, #tpu.memory_space<semaphore_mem>> -> memref<1x!tpu.dma_semaphore, #tpu.memory_space<semaphore_mem>>
      %68 = tpu.memref_squeeze %67 : memref<1x!tpu.dma_semaphore, #tpu.memory_space<semaphore_mem>> -> memref<!tpu.dma_semaphore, #tpu.memory_space<semaphore_mem>>
      tpu.enqueue_dma source(%64 : memref<1x128xf32, #tpu.memory_space<any>>) target(%66 : memref<1x128xf32, #tpu.memory_space<vmem>>) target_semaphore(%68 : memref<!tpu.dma_semaphore, #tpu.memory_space<semaphore_mem>>)
      %c4_i32 = arith.constant 4 : i32
      %69 = arith.addi %28, %c4_i32 : i32
      %70 = arith.index_cast %69 : i32 to index
      %71 = memref.load %arg2[%70] : memref<16xi32, #tpu.memory_space<smem>>
      %c0_i32_34 = arith.constant 0 : i32
      %c63_i32_35 = arith.constant 63 : i32
      %72 = arith.maxsi %c0_i32_34, %71 : i32
      %73 = arith.minsi %c63_i32_35, %72 : i32
      %c0_i32_36 = arith.constant 0 : i32
      %74 = tpu.memref_slice %arg3[%73, %c0_i32_36] : memref<64x128xf32, #tpu.memory_space<any>> -> memref<1x128xf32, #tpu.memory_space<any>>
      %c0_i32_37 = arith.constant 0 : i32
      %75 = tpu.memref_slice %arg6[%25, %c4_i32, %c0_i32_37] : memref<2x8x128xf32, #tpu.memory_space<vmem>> -> memref<1x1x128xf32, #tpu.memory_space<vmem>>
      %76 = tpu.memref_squeeze %75 : memref<1x1x128xf32, #tpu.memory_space<vmem>> -> memref<1x128xf32, #tpu.memory_space<vmem>>
      %77 = tpu.memref_slice %arg7[%25] : memref<2x!tpu.dma_semaphore, #tpu.memory_space<semaphore_mem>> -> memref<1x!tpu.dma_semaphore, #tpu.memory_space<semaphore_mem>>
      %78 = tpu.memref_squeeze %77 : memref<1x!tpu.dma_semaphore, #tpu.memory_space<semaphore_mem>> -> memref<!tpu.dma_semaphore, #tpu.memory_space<semaphore_mem>>
      tpu.enqueue_dma source(%74 : memref<1x128xf32, #tpu.memory_space<any>>) target(%76 : memref<1x128xf32, #tpu.memory_space<vmem>>) target_semaphore(%78 : memref<!tpu.dma_semaphore, #tpu.memory_space<semaphore_mem>>)
      %c5_i32 = arith.constant 5 : i32
      %79 = arith.addi %28, %c5_i32 : i32
      %80 = arith.index_cast %79 : i32 to index
      %81 = memref.load %arg2[%80] : memref<16xi32, #tpu.memory_space<smem>>
      %c0_i32_38 = arith.constant 0 : i32
      %c63_i32_39 = arith.constant 63 : i32
      %82 = arith.maxsi %c0_i32_38, %81 : i32
      %83 = arith.minsi %c63_i32_39, %82 : i32
      %c0_i32_40 = arith.constant 0 : i32
      %84 = tpu.memref_slice %arg3[%83, %c0_i32_40] : memref<64x128xf32, #tpu.memory_space<any>> -> memref<1x128xf32, #tpu.memory_space<any>>
      %c0_i32_41 = arith.constant 0 : i32
      %85 = tpu.memref_slice %arg6[%25, %c5_i32, %c0_i32_41] : memref<2x8x128xf32, #tpu.memory_space<vmem>> -> memref<1x1x128xf32, #tpu.memory_space<vmem>>
      %86 = tpu.memref_squeeze %85 : memref<1x1x128xf32, #tpu.memory_space<vmem>> -> memref<1x128xf32, #tpu.memory_space<vmem>>
      %87 = tpu.memref_slice %arg7[%25] : memref<2x!tpu.dma_semaphore, #tpu.memory_space<semaphore_mem>> -> memref<1x!tpu.dma_semaphore, #tpu.memory_space<semaphore_mem>>
      %88 = tpu.memref_squeeze %87 : memref<1x!tpu.dma_semaphore, #tpu.memory_space<semaphore_mem>> -> memref<!tpu.dma_semaphore, #tpu.memory_space<semaphore_mem>>
      tpu.enqueue_dma source(%84 : memref<1x128xf32, #tpu.memory_space<any>>) target(%86 : memref<1x128xf32, #tpu.memory_space<vmem>>) target_semaphore(%88 : memref<!tpu.dma_semaphore, #tpu.memory_space<semaphore_mem>>)
      %c6_i32 = arith.constant 6 : i32
      %89 = arith.addi %28, %c6_i32 : i32
      %90 = arith.index_cast %89 : i32 to index
      %91 = memref.load %arg2[%90] : memref<16xi32, #tpu.memory_space<smem>>
      %c0_i32_42 = arith.constant 0 : i32
      %c63_i32_43 = arith.constant 63 : i32
      %92 = arith.maxsi %c0_i32_42, %91 : i32
      %93 = arith.minsi %c63_i32_43, %92 : i32
      %c0_i32_44 = arith.constant 0 : i32
      %94 = tpu.memref_slice %arg3[%93, %c0_i32_44] : memref<64x128xf32, #tpu.memory_space<any>> -> memref<1x128xf32, #tpu.memory_space<any>>
      %c0_i32_45 = arith.constant 0 : i32
      %95 = tpu.memref_slice %arg6[%25, %c6_i32, %c0_i32_45] : memref<2x8x128xf32, #tpu.memory_space<vmem>> -> memref<1x1x128xf32, #tpu.memory_space<vmem>>
      %96 = tpu.memref_squeeze %95 : memref<1x1x128xf32, #tpu.memory_space<vmem>> -> memref<1x128xf32, #tpu.memory_space<vmem>>
      %97 = tpu.memref_slice %arg7[%25] : memref<2x!tpu.dma_semaphore, #tpu.memory_space<semaphore_mem>> -> memref<1x!tpu.dma_semaphore, #tpu.memory_space<semaphore_mem>>
      %98 = tpu.memref_squeeze %97 : memref<1x!tpu.dma_semaphore, #tpu.memory_space<semaphore_mem>> -> memref<!tpu.dma_semaphore, #tpu.memory_space<semaphore_mem>>
      tpu.enqueue_dma source(%94 : memref<1x128xf32, #tpu.memory_space<any>>) target(%96 : memref<1x128xf32, #tpu.memory_space<vmem>>) target_semaphore(%98 : memref<!tpu.dma_semaphore, #tpu.memory_space<semaphore_mem>>)
      %c7_i32 = arith.constant 7 : i32
      %99 = arith.addi %28, %c7_i32 : i32
      %100 = arith.index_cast %99 : i32 to index
      %101 = memref.load %arg2[%100] : memref<16xi32, #tpu.memory_space<smem>>
      %c0_i32_46 = arith.constant 0 : i32
      %c63_i32_47 = arith.constant 63 : i32
      %102 = arith.maxsi %c0_i32_46, %101 : i32
      %103 = arith.minsi %c63_i32_47, %102 : i32
      %c0_i32_48 = arith.constant 0 : i32
      %104 = tpu.memref_slice %arg3[%103, %c0_i32_48] : memref<64x128xf32, #tpu.memory_space<any>> -> memref<1x128xf32, #tpu.memory_space<any>>
      %c0_i32_49 = arith.constant 0 : i32
      %105 = tpu.memref_slice %arg6[%25, %c7_i32, %c0_i32_49] : memref<2x8x128xf32, #tpu.memory_space<vmem>> -> memref<1x1x128xf32, #tpu.memory_space<vmem>>
      %106 = tpu.memref_squeeze %105 : memref<1x1x128xf32, #tpu.memory_space<vmem>> -> memref<1x128xf32, #tpu.memory_space<vmem>>
      %107 = tpu.memref_slice %arg7[%25] : memref<2x!tpu.dma_semaphore, #tpu.memory_space<semaphore_mem>> -> memref<1x!tpu.dma_semaphore, #tpu.memory_space<semaphore_mem>>
      %108 = tpu.memref_squeeze %107 : memref<1x!tpu.dma_semaphore, #tpu.memory_space<semaphore_mem>> -> memref<!tpu.dma_semaphore, #tpu.memory_space<semaphore_mem>>
      tpu.enqueue_dma source(%104 : memref<1x128xf32, #tpu.memory_space<any>>) target(%106 : memref<1x128xf32, #tpu.memory_space<vmem>>) target_semaphore(%108 : memref<!tpu.dma_semaphore, #tpu.memory_space<semaphore_mem>>)
      %c8_i32_50 = arith.constant 8 : i32
    } else {
    }
    %c8_i32 = arith.constant 8 : i32
    %13 = arith.muli %arg1, %c8_i32 : i32
    %14 = tpu.assume_multiple %13, 8 : i32
    %15 = arith.index_cast %0 : i32 to index
    %c0 = arith.constant 0 : index
    %c0_8 = arith.constant 0 : index
    %16 = vector.load %arg6[%15, %c0, %c0_8] : memref<2x8x128xf32, #tpu.memory_space<vmem>>, vector<1x8x128xf32>
    %17 = vector.shape_cast %16 : vector<1x8x128xf32> to vector<8x128xf32>
    %18 = arith.index_cast %14 : i32 to index
    %c0_9 = arith.constant 0 : index
    %19 = vector.load %arg4[%18, %c0_9] : memref<8x128xf32, #tpu.memory_space<vmem>>, vector<8x128xf32>
    %20 = arith.addf %17, %19 : vector<8x128xf32>
    %c0_10 = arith.constant 0 : index
    %c0_11 = arith.constant 0 : index
    %c0_12 = arith.constant 0 : index
    %21 = vector.load %arg5[%c0_10, %c0_11, %c0_12] : memref<1x8x128xf32, #tpu.memory_space<vmem>>, vector<1x8x128xf32>
    %22 = vector.shape_cast %21 : vector<1x8x128xf32> to vector<8x128xf32>
    %23 = vector.shape_cast %20 : vector<8x128xf32> to vector<1x8x128xf32>
    tpu.vector_store %arg5[%c0_10, %c0_11, %c0_12], %23 {strides = array<i32>} : memref<1x8x128xf32, #tpu.memory_space<vmem>>, vector<1x8x128xf32>,
    return
  }
  func.func @transform_1(%arg0: i32, %arg1: i32, %arg2: memref<16xi32, #tpu.memory_space<smem>>) -> (i32, i32) {
    %c0_i32 = arith.constant 0 : i32
    %c0_i32_0 = arith.constant 0 : i32
    %c0_i32_1 = arith.constant 0 : i32
    return %c0_i32, %c0_i32_0 : i32, i32
  }
  func.func @transform_2(%arg0: i32, %arg1: i32, %arg2: memref<16xi32, #tpu.memory_space<smem>>) -> (i32, i32, i32) {
    %c0_i32 = arith.constant 0 : i32
    %c0_i32_0 = arith.constant 0 : i32
    return %arg0, %arg1, %c0_i32 : i32, i32, i32
  }
}

</mosaic_0001>

<bundles_post_ra>
// kernel: tpu_custom_call.1
= control target key start
LH: loop header
LB: loop body
LE: loop exit
PB: predicated region body
PF: predicated region fallthrough
CT: control target
= control target key end

     0   :  { %s1577_s0 = inlined_call_operand.hbm [shape: s32[16], index: 0, kind: input, shape index: {}]   ;;  %s1578_s1 = inlined_call_operand.hbm [shape: f32[64,128], index: 1, kind: input, shape index: {}]   ;;  %s1579_s2 = inlined_call_operand.hbm [shape: f32[8,128], index: 2, kind: input, shape index: {}]   ;;  %s1580_s3 = inlined_call_operand.hbm [shape: f32[2,8,128], index: 3, kind: output, shape index: {}]  }
   0x1   :  { %1591 = sst [smem:[#allocation52_spill]] %s1579_s2  ;;  %s890_s14 = scalar_lea.hbm %s1577_s0, 16 }
   0x2   :  { %p891_p0 = scmp.ne.s32.totalorder %s1577_s0, %s890_s14  ;;  %p894_p1 = scmp.lt.u32.totalorder %s890_s14, %s1577_s0 }
   0x4   :  { %p896_p2 = pnand %p894_p1, %p891_p0 }
   0x6   :  { %899 = shalt.err (!%p896_p2)  }
   0x7   :  { %s1208_s19 = smov [#allocation5]  }
   0x8   :  { %9 = dma.hbm_to_smem %s1577_s0, 16, %s1208_s19, [#allocation4] }
   0x9   :  { %1172 = dma.done.wait [#allocation4], 16 }
   0xa   :  { %1173 = vsyncadd [#allocation4], 4294967280 }
   0xb   :  { %11 = sfence }
   0xc   :  { %12 = vsyncpa [#allocation7], 0 }
   0xd   :  { %13 = vsyncpa [#allocation8], 0 }
   0xe   :  { %15 = vsyncpa [#allocation8 + $0x1], 0  ;;  %s1244_s22 = smov 0   ;;  %s1246_s23 = smov 0  }
   0xf   :  { %s1248_s24 = smov 0   ;;  %s1250_s25 = smov 0  }
  0x10   :  { %s1252_s26 = smov 0   ;;  %s1254_s27 = smov 0  }
  0x11 LB: > { %1592 = sst [smem:[#allocation48_spill]] %s1194_s24  ;;  %s672_s0 = sadd.s32 4294967295, %s1206_s27   ;;  %s1206_s27 = sphi %s1254_s27, %s21_s27   ;;  %s1202_s26 = sphi %s1252_s26, %s1613_s26   ;;  %s1198_s25 = sphi %s1250_s25, %s1612_s25   ;;  %s1194_s24 = sphi %s1248_s24, %s1611_s24   ;;  %s1190_s23 = sphi %s1246_s23, %s1615_s23   ;;  %s1186_s22 = sphi %s1244_s22, %s1614_s22  }
  0x12   : > { %1593 = sst [smem:[#allocation49_spill]] %s1202_s26  ;;  %s673_s28 = sadd.s32 4294967294, %s1206_s27  }
  0x13   : > { %s33_s29 = sadd.s32 1, %s1202_s26  ;;  %s63_s30 = sadd.s32 1, %s1194_s24 }
  0x14   : > { %p35_p3 = scmp.ge.s32.totalorder %s33_s29, 2  ;;  %p73_p4 = scmp.ne.s32.totalorder %s1194_s24, %s1190_s23 }
  0x15   : > { %p74_p5 = scmp.eq.s32.totalorder %s672_s0, 1  ;;  %p79_p6 = scmp.ne.s32.totalorder %s1190_s23, %s1186_s22 }
  0x16   : > { %s1617_s29 = smov (%p35_p3, %s33_s29), 0  ;;  %p80_p8 = scmp.eq.s32.totalorder %s673_s28, 1 }
  0x17   : > { %1594 = sst [smem:[#allocation50_spill]] %s1617_s29  ;;  %p1284_p7 = por %p74_p5, %p73_p4 }
  0x18   : > { %s58_s5 = ssub.s32 %s1202_s26, %s1617_s29  ;;  %p674_p9 = scmp.ge.s32.totalorder %s1206_s27, 1 }
  0x19   : > { %s1595_s4 = scalar_select %p1284_p7, 1, 0 }
  0x1a   : > { %p61_p10 = scmp.eq.s32.totalorder %s58_s5, 0  ;;  %p1291_p11 = por %p80_p8, %p79_p6 }
  0x1b   : > { %p87_p12 = scmp.lt.s32.totalorder %s1206_s27, 3  ;;  %p1303_p0 = scmp.eq.s32.totalorder %s672_s0, 0 }
  0x1c   : > { %s1596_s6 = scalar_select %p1291_p11, 1, 0 }
  0x1d   : > { %s1297_s7 = scalar_select %p61_p10, %s1194_s24, %s63_s30  }
  0x1e   : > { %p1299_p13 = pnand %p674_p9, %p87_p12  ;;  %s1209_s10 = smov [#allocation6]  }
  0x1f   : > { %1597 = sst [smem:[#allocation51_spill]] %s1297_s7  ;;  %s100_s11 = sshll.u32 %s1209_s10, 4  ;;  %s101_s11 = int_to_ptr.vmem [resolvable:$true] %s100_s11 }
  0x20   : > { %s1598_s8 = scalar_select %p1299_p13, 1, 0 }
  0x21   : > { %s1599_s9 = scalar_select %p1303_p0, 1, 0 }
  0x22   : > { %p828_p1 = pneg %p1299_p13  ;;  %s1601_s2 = sld [smem:[#allocation52_spill]] }
  0x24   : > { %p1311_p2 = pnand %p1303_p0, %p828_p1 }
  0x26   : > { %p902_p4 = pneg %p1311_p2 }
  0x28   : > { %s900_s15 = scalar_lea.hbm %s1601_s2, 128 }
  0x29   : > { %p901_p3 = scmp.ne.s32.totalorder %s1601_s2, %s900_s15  ;;  %p907_p8 = scmp.lt.u32.totalorder %s900_s15, %s1601_s2 }
  0x2b   : > { %p903_p5 = pnand %p902_p4, %p901_p3 }
  0x2d   : > { %p904_p6 = pneg %p903_p5 }
  0x2f   : > { %p909_p9 = pnand %p907_p8, %p904_p6 }
  0x31   : > { %912 = shalt.err (!%p909_p9)
}
  0x32   : > { %s913_s20 = scalar_lea.vmem %s101_s11, 128  ;;  %p921_p11 = scmp.lt.s32.totalorder %s101_s11, %s101_s11 }
  0x33   : > { %p914_p10 = scmp.ne.s32.totalorder %s101_s11, %s913_s20  ;;  %p922_p7 = scmp.lt.s32.totalorder %s913_s20, %s913_s20 }
  0x35   : > { %p916_p12 = pnand %p914_p10, %p902_p4  ;;  %p923_p0 = por %p922_p7, %p921_p11 }
  0x37   : > { %p917_p1 = pneg %p916_p12 }
  0x39   : > { %p924_p13 = pnand %p923_p0, %p917_p1 }
  0x3b   : > { %927 = shalt.err (!%p924_p13)
}
  0x3c   : > { %831 = dma.hbm_to_vmem [thread:$0]  (!%p1311_p2), %s1601_s2, 128, %s101_s11, [#allocation7]  }
  0x3d   : > { %p1602_p3 = scmp.ne.s32.totalorder %s1598_s8, 0 }
  0x3e   : > { %p1603_p5 = scmp.ne.s32.totalorder (!%p1602_p3), %s1599_s9, 0 }
  0x3f   : > { %113 = sbr.rel (%p1602_p3) target bundleno = 307 (0x133), region = 24 }
  0x46   : > { %1175 = dma.done.wait (%p1603_p5), [#allocation7], 128  }
  0x47   : > { %1177 = vsyncadd (%p1603_p5), [#allocation7], 4294967168  ;;  %s1585_s28 = sand.u32 1, %s1190_s23   ;;  %s1339_s30 = sshll.u32 %s1198_s25, 3 }
  0x48   : > { %s1343_s5 = sshll.u32 %s1585_s28, 3  ;;  %s134_s8 = sld [smem:[#allocation5 + %s1339_s30]] }
  0x49   : > { %s1586_s10 = smov [#allocation2]   ;;  %s155_s12 = sadd.s32 1, %s1339_s30 }
  0x4a   : > { %s151_s11 = sshll.u32 %s1586_s10, 4  ;;  %s1350_s9 = sld [smem:[#allocation5 + %s155_s12]]  ;;  %s1348_s11 = int_to_ptr.vmem [resolvable:$true] %s151_s11 }
  0x4b   : > { %s555_s13 = scalar_lea.vmem %s1586_s10, 1  ;;  %s176_s14 = sadd.s32 2, %s1339_s30 }
  0x4c   : > { %s172_s15 = sshll.u32 %s555_s13, 4  ;;  %s1354_s16 = sld [smem:[#allocation5 + %s176_s14]]  ;;  %s1356_s15 = int_to_ptr.vmem [resolvable:$true] %s172_s15 }
  0x4d   : > { %s1359_s17 = scalar_lea.vmem %s1586_s10, 2  ;;  %s1372_s28 = scalar_lea.hbm %s1578_s1, 1024 }
  0x4e   : > { %p135_p7 = scmp.gt.s32.totalorder %s134_s8, 0  ;;  %p680_p11 = scmp.lt.s32.totalorder %s134_s8, 63 }
  0x50   : > { %s1619_s8 = smov (!%p135_p7, %s134_s8), 0  ;;  %p157_p13 = scmp.gt.s32.totalorder %s1350_s9, 0 }
  0x51   : > { %p686_p0 = scmp.lt.s32.totalorder %s1350_s9, 63  ;;  %s1621_s8 = smov (!%p680_p11, %s1619_s8), 63 }
  0x52   : > { %s158_s18 = scalar_select %p157_p13, %s1350_s9, 0 }
  0x53   : > { %s685_s19 = sshll.u32 %s1621_s8, 4  ;;  %p178_p2 = scmp.gt.s32.totalorder %s1354_s16, 0 }
  0x54   : > { %s140_s0 = scalar_lea.hbm %s1578_s1, %s685_s19 }
  0x55   : > { %s928_s12 = scalar_lea.hbm %s140_s0, 16  ;;  %p931_p8 = scmp.lt.u32.totalorder %s140_s0, %s1578_s1 }
  0x56   : > { %p929_p6 = scmp.ne.s32.totalorder %s140_s0, %s928_s12  ;;  %p932_p9 = scmp.lt.u32.totalorder %s1372_s28, %s928_s12 }
  0x57   : > { %p934_p12 = scmp.lt.u32.totalorder %s928_s12, %s140_s0 }
  0x58   : > { %p933_p10 = por %p932_p9, %p931_p8 }
  0x5a   : > { %p935_p1 = por %p934_p12, %p933_p10 }
  0x5c   : > { %p936_p3 = pnand %p935_p1, %p929_p6 }
  0x5e   : > { %939 = shalt.err (!%p936_p3)  }
  0x5f   : > { %s940_s8 = scalar_lea.vmem %s1348_s11, 16  ;;  %s1381_s19 = scalar_lea.vmem %s1348_s11, 256 }
  0x60   : > { %p941_p5 = scmp.ne.s32.totalorder %s1348_s11, %s940_s8  ;;  %p945_p7 = scmp.lt.s32.totalorder %s1348_s11, %s1348_s11 }
  0x61   : > { %p946_p11 = scmp.lt.s32.totalorder %s1381_s19, %s940_s8 }
  0x63   : > { %p947_p13 = por %p946_p11, %p945_p7 }
  0x65   : > { %p948_p4 = pnand %p947_p13, %p941_p5 }
  0x67   : > { %951 = shalt.err (!%p948_p4)  }
  0x68   : > { %154 = dma.hbm_to_vmem [thread:$0]  %s140_s0, 16, %s1348_s11, [#allocation3] }
  0x69   : > { %s1623_s18 = smov (!%p686_p0, %s158_s18), 63  ;;  %s193_s20 = sshll.u32 %s1359_s17, 4  ;;  %s1396_s20 = int_to_ptr.vmem [resolvable:$true] %s193_s20 }
  0x6a   : > { %s179_s2 = scalar_select %p178_p2, %s1354_s16, 0 }
  0x6b   : > { %s691_s10 = sshll.u32 %s1623_s18, 4 }
  0x6c   : > { %s162_s13 = scalar_lea.hbm %s1578_s1, %s691_s10 }
  0x6d   : > { %s952_s14 = scalar_lea.hbm %s162_s13, 16  ;;  %p955_p6 = scmp.lt.u32.totalorder %s162_s13, %s1578_s1 }
  0x6e   : > { %p953_p4 = scmp.ne.s32.totalorder %s162_s13, %s952_s14  ;;  %p956_p8 = scmp.lt.u32.totalorder %s1372_s28, %s952_s14 }
  0x6f   : > { %p958_p10 = scmp.lt.u32.totalorder %s952_s14, %s162_s13 }
  0x70   : > { %p957_p9 = por %p956_p8, %p955_p6 }
  0x72   : > { %p959_p0 = por %p958_p10, %p957_p9 }
  0x74   : > { %p960_p12 = pnand %p959_p0, %p953_p4 }
  0x76   : > { %963 = shalt.err (!%p960_p12)  }
  0x77   : > { %s964_s9 = scalar_lea.vmem %s1356_s15, 16  ;;  %p969_p1 = scmp.lt.s32.totalorder %s1356_s15, %s1348_s11 }
  0x78   : > { %p965_p2 = scmp.ne.s32.totalorder %s1356_s15, %s964_s9  ;;  %p970_p3 = scmp.lt.s32.totalorder %s1381_s19, %s964_s9 }
  0x7a   : > { %p971_p5 = por %p970_p3, %p969_p1 }
  0x7c   : > { %p972_p7 = pnand %p971_p5, %p965_p2 }
  0x7e   : > { %975 = shalt.err (!%p972_p7)  }
  0x7f   : > { %175 = dma.hbm_to_vmem [thread:$0]  %s162_s13, 16, %s1356_s15, [#allocation3] }
  0x80   : > { %p1604_p11 = scmp.lt.s32.totalorder %s1354_s16, 63  ;;  %s197_s29 = sadd.s32 3, %s1339_s30 }
  0x81   : > { %s1605_s17 = smov [#allocation2]   ;;  %s1414_s10 = sld [smem:[#allocation5 + %s197_s29]] }
  0x82   : > { %s1625_s2 = smov (!%p1604_p11, %s179_s2), 63  ;;  %s1412_s18 = scalar_lea.vmem %s1605_s17, 3 }
  0x83   : > { %s697_s0 = sshll.u32 %s1625_s2, 4 }
  0x84   : > { %s183_s14 = scalar_lea.hbm %s1578_s1, %s697_s0 }
  0x85   : > { %s976_s8 = scalar_lea.hbm %s183_s14, 16  ;;  %p979_p4 = scmp.lt.u32.totalorder %s183_s14, %s1578_s1 }
  0x86   : > { %p977_p13 = scmp.ne.s32.totalorder %s183_s14, %s976_s8  ;;  %p980_p6 = scmp.lt.u32.totalorder %s1372_s28, %s976_s8 }
  0x87   : > { %p982_p9 = scmp.lt.u32.totalorder %s976_s8, %s183_s14 }
  0x88   : > { %p981_p8 = por %p980_p6, %p979_p4 }
  0x8a   : > { %p983_p10 = por %p982_p9, %p981_p8 }
  0x8c   : > { %p984_p0 = pnand %p983_p10, %p977_p13 }
  0x8e   : > { %987 = shalt.err (!%p984_p0)  }
  0x8f   : > { %s988_s15 = scalar_lea.vmem %s1396_s20, 16  ;;  %p993_p2 = scmp.lt.s32.totalorder %s1396_s20, %s1348_s11 }
  0x90   : > { %p989_p12 = scmp.ne.s32.totalorder %s1396_s20, %s988_s15  ;;  %p994_p1 = scmp.lt.s32.totalorder %s1381_s19, %s988_s15 }
  0x92   : > { %p995_p3 = por %p994_p1, %p993_p2 }
  0x94   : > { %p996_p5 = pnand %p995_p3, %p989_p12 }
  0x96   : > { %999 = shalt.err (!%p996_p5)  }
  0x97   : > { %196 = dma.hbm_to_vmem [thread:$0]  %s183_s14, 16, %s1396_s20, [#allocation3] }
  0x98   : > { %s214_s26 = sshll.u32 %s1412_s18, 4  ;;  %s218_s16 = sadd.s32 4, %s1339_s30  ;;  %s215_s26 = int_to_ptr.vmem [resolvable:$true] %s214_s26 }
  0x99   : > { %s1431_s2 = sld [smem:[#allocation5 + %s218_s16]]  ;;  %s570_s13 = scalar_lea.vmem %s1605_s17, 4 }
  0x9a   : > { %s235_s29 = sshll.u32 %s570_s13, 4  ;;  %s239_s0 = sadd.s32 5, %s1339_s30  ;;  %s1440_s29 = int_to_ptr.vmem [resolvable:$true] %s235_s29 }
  0x9b   : > { %p199_p7 = scmp.gt.s32.totalorder %s1414_s10, 0  ;;  %p698_p11 = scmp.lt.s32.totalorder %s1414_s10, 63 }
  0x9c   : > { %s1437_s21 = sld [smem:[#allocation5 + %s239_s0]]  ;;  %s1443_s20 = scalar_lea.vmem %s1605_s17, 5 }
  0x9d   : > { %s1627_s10 = smov (!%p199_p7, %s1414_s10), 0  ;;  %s260_s18 = sadd.s32 6, %s1339_s30 }
  0x9e   : > { %s1629_s10 = smov (!%p698_p11, %s1627_s10), 63 }
  0x9f   : > { %p220_p13 = scmp.gt.s32.totalorder %s1431_s2, 0  ;;  %s703_s12 = sshll.u32 %s1629_s10, 4 }
  0xa0   : > { %s204_s9 = scalar_lea.hbm %s1578_s1, %s703_s12 }
  0xa1   : > { %s1000_s15 = scalar_lea.hbm %s204_s9, 16  ;;  %p1003_p9 = scmp.lt.u32.totalorder %s204_s9, %s1578_s1 }
  0xa2   : > { %p241_p6 = scmp.gt.s32.totalorder %s1437_s21, 0  ;;  %p1001_p8 = scmp.ne.s32.totalorder %s204_s9, %s1000_s15 }
  0xa3   : > { %p1004_p10 = scmp.lt.u32.totalorder %s1372_s28, %s1000_s15  ;;  %p1006_p12 = scmp.lt.u32.totalorder %s1000_s15, %s204_s9 }
  0xa5   : > { %p1005_p0 = por %p1004_p10, %p1003_p9 }
  0xa7   : > { %p1007_p2 = por %p1006_p12, %p1005_p0 }
  0xa9   : > { %p1008_p1 = pnand %p1007_p2, %p1001_p8 }
  0xab   : > { %1011 = shalt.err (!%p1008_p1)  }
  0xac   : > { %s1012_s0 = scalar_lea.vmem %s215_s26, 16  ;;  %p1017_p5 = scmp.lt.s32.totalorder %s215_s26, %s1348_s11 }
  0xad   : > { %p1013_p3 = scmp.ne.s32.totalorder %s215_s26, %s1012_s0  ;;  %p1018_p7 = scmp.lt.s32.totalorder %s1381_s19, %s1012_s0 }
  0xaf   : > { %p1019_p11 = por %p1018_p7, %p1017_p5 }
  0xb1   : > { %p1020_p4 = pnand %p1019_p11, %p1013_p3 }
  0xb3   : > { %1023 = shalt.err (!%p1020_p4)  }
  0xb4   : > { %217 = dma.hbm_to_vmem [thread:$0]  %s204_s9, 16, %s215_s26, [#allocation3] }
  0xb5   : > { %s221_s10 = scalar_select %p220_p13, %s1431_s2, 0 }
  0xb6   : > { %s242_s12 = scalar_select %p241_p6, %s1437_s21, 0 }
  0xb7   : > { %p1606_p8 = scmp.lt.s32.totalorder %s1431_s2, 63  ;;  %p710_p9 = scmp.lt.s32.totalorder %s1437_s21, 63 }
  0xb8   : > { %s256_s14 = sshll.u32 %s1443_s20, 4  ;;  %s1468_s15 = sld [smem:[#allocation5 + %s260_s18]]  ;;  %s257_s14 = int_to_ptr.vmem [resolvable:$true] %s256_s14 }
  0xb9   : > { %s1631_s10 = smov (!%p1606_p8, %s221_s10), 63  ;;  %s1474_s13 = scalar_lea.vmem %s1605_s17, 6 }
  0xba   : > { %s709_s8 = sshll.u32 %s1631_s10, 4 }
  0xbb   : > { %s225_s16 = scalar_lea.hbm %s1578_s1, %s709_s8 }
  0xbc   : > { %s1024_s0 = scalar_lea.hbm %s225_s16, 16  ;;  %p1027_p13 = scmp.lt.u32.totalorder %s225_s16, %s1578_s1 }
  0xbd   : > { %p1025_p4 = scmp.ne.s32.totalorder %s225_s16, %s1024_s0  ;;  %p1028_p6 = scmp.lt.u32.totalorder %s1372_s28, %s1024_s0 }
  0xbe   : > { %p1030_p0 = scmp.lt.u32.totalorder %s1024_s0, %s225_s16 }
  0xbf   : > { %p1029_p10 = por %p1028_p6, %p1027_p13 }
  0xc1   : > { %p1031_p12 = por %p1030_p0, %p1029_p10 }
  0xc3   : > { %p1032_p2 = pnand %p1031_p12, %p1025_p4 }
  0xc5   : > { %1035 = shalt.err (!%p1032_p2)  }
  0xc6   : > { %s1036_s2 = scalar_lea.vmem %s1440_s29, 16  ;;  %p1041_p3 = scmp.lt.s32.totalorder %s1440_s29, %s1348_s11 }
  0xc7   : > { %p1037_p1 = scmp.ne.s32.totalorder %s1440_s29, %s1036_s2  ;;  %p1042_p5 = scmp.lt.s32.totalorder %s1381_s19, %s1036_s2 }
  0xc9   : > { %p1043_p7 = por %p1042_p5, %p1041_p3 }
  0xcb   : > { %p1044_p11 = pnand %p1043_p7, %p1037_p1 }
  0xcd   : > { %1047 = shalt.err (!%p1044_p11)  }
  0xce   : > { %238 = dma.hbm_to_vmem [thread:$0]  %s225_s16, 16, %s1440_s29, [#allocation3] }
  0xcf   : > { %s1633_s12 = smov (!%p710_p9, %s242_s12), 63  ;;  %s277_s24 = sshll.u32 %s1474_s13, 4  ;;  %s278_s24 = int_to_ptr.vmem [resolvable:$true] %s277_s24 }
  0xd0   : > { %s715_s7 = sshll.u32 %s1633_s12, 4  ;;  %s281_s20 = sadd.s32 7, %s1339_s30 }
  0xd1   : > { %s246_s8 = scalar_lea.hbm %s1578_s1, %s715_s7  ;;  %p262_p8 = scmp.gt.s32.totalorder %s1468_s15, 0 }
  0xd2   : > { %s1048_s26 = scalar_lea.hbm %s246_s8, 16  ;;  %p1051_p13 = scmp.lt.u32.totalorder %s246_s8, %s1578_s1 }
  0xd3   : > { %p1049_p4 = scmp.ne.s32.totalorder %s246_s8, %s1048_s26  ;;  %p1052_p6 = scmp.lt.u32.totalorder %s1372_s28, %s1048_s26 }
  0xd4   : > { %p1054_p0 = scmp.lt.u32.totalorder %s1048_s26, %s246_s8 }
  0xd5   : > { %p1053_p10 = por %p1052_p6, %p1051_p13 }
  0xd7   : > { %p1055_p12 = por %p1054_p0, %p1053_p10 }
  0xd9   : > { %p1056_p9 = pnand %p1055_p12, %p1049_p4 }
  0xdb   : > { %1059 = shalt.err (!%p1056_p9)  }
  0xdc   : > { %s1060_s29 = scalar_lea.vmem %s257_s14, 16  ;;  %p1065_p1 = scmp.lt.s32.totalorder %s257_s14, %s1348_s11 }
  0xdd   : > { %p1061_p2 = scmp.ne.s32.totalorder %s257_s14, %s1060_s29  ;;  %p1066_p3 = scmp.lt.s32.totalorder %s1381_s19, %s1060_s29 }
  0xdf   : > { %p1067_p5 = por %p1066_p3, %p1065_p1 }
  0xe1   : > { %p1068_p7 = pnand %p1067_p5, %p1061_p2 }
  0xe3   : > { %1071 = shalt.err (!%p1068_p7)  }
  0xe4   : > { %259 = dma.hbm_to_vmem [thread:$0]  %s246_s8, 16, %s257_s14, [#allocation3] }
  0xe5   : > { %s263_s30 = scalar_select %p262_p8, %s1468_s15, 0 }
  0xe6   : > { %p716_p11 = scmp.lt.s32.totalorder %s1468_s15, 63  ;;  %s282_s21 = sld [smem:[#allocation5 + %s281_s20]] }
  0xe7   : > { %s585_s7 = scalar_lea.vmem %s1605_s17, 7 }
  0xe8   : > { %s1635_s30 = smov (!%p716_p11, %s263_s30), 63 }
  0xe9   : > { %s721_s12 = sshll.u32 %s1635_s30, 4 }
  0xea   : > { %s267_s2 = scalar_lea.hbm %s1578_s1, %s721_s12 }
  0xeb   : > { %s1072_s18 = scalar_lea.hbm %s267_s2, 16  ;;  %p1075_p13 = scmp.lt.u32.totalorder %s267_s2, %s1578_s1 }
  0xec   : > { %p1073_p4 = scmp.ne.s32.totalorder %s267_s2, %s1072_s18  ;;  %p1076_p6 = scmp.lt.u32.totalorder %s1372_s28, %s1072_s18 }
  0xed   : > { %p1078_p8 = scmp.lt.u32.totalorder %s1072_s18, %s267_s2 }
  0xee   : > { %p1077_p10 = por %p1076_p6, %p1075_p13 }
  0xf0   : > { %p1079_p0 = por %p1078_p8, %p1077_p10 }
  0xf2   : > { %p1080_p12 = pnand %p1079_p0, %p1073_p4 }
  0xf4   : > { %1083 = shalt.err (!%p1080_p12)  }
  0xf5   : > { %s1084_s15 = scalar_lea.vmem %s278_s24, 16  ;;  %p1089_p2 = scmp.lt.s32.totalorder %s278_s24, %s1348_s11 }
  0xf6   : > { %p1085_p9 = scmp.ne.s32.totalorder %s278_s24, %s1084_s15  ;;  %p1090_p1 = scmp.lt.s32.totalorder %s1381_s19, %s1084_s15 }
  0xf8   : > { %p1091_p3 = por %p1090_p1, %p1089_p2 }
  0xfa   : > { %p1092_p5 = pnand %p1091_p3, %p1085_p9 }
  0xfc   : > { %1095 = shalt.err (!%p1092_p5)  }
  0xfd   : > { %280 = dma.hbm_to_vmem [thread:$0]  %s267_s2, 16, %s278_s24, [#allocation3] }
  0xfe   : > { %p283_p7 = scmp.gt.s32.totalorder %s282_s21, 0  ;;  %p722_p11 = scmp.lt.s32.totalorder %s282_s21, 63 }
  0xff   : > { %s298_s17 = sshll.u32 %s585_s7, 4  ;;  %s299_s17 = int_to_ptr.vmem [resolvable:$true] %s298_s17 }
 0x100   : > { %s1637_s21 = smov (!%p283_p7, %s282_s21), 0 }
 0x101   : > { %s1639_s21 = smov (!%p722_p11, %s1637_s21), 63 }
 0x102   : > { %s727_s20 = sshll.u32 %s1639_s21, 4 }
 0x103   : > { %s288_s9 = scalar_lea.hbm %s1578_s1, %s727_s20 }
 0x104   : > { %s1096_s0 = scalar_lea.hbm %s288_s9, 16  ;;  %p1099_p13 = scmp.lt.u32.totalorder %s288_s9, %s1578_s1 }
 0x105   : > { %p1097_p4 = scmp.ne.s32.totalorder %s288_s9, %s1096_s0  ;;  %p1100_p6 = scmp.lt.u32.totalorder %s1372_s28, %s1096_s0 }
 0x106   : > { %p1102_p8 = scmp.lt.u32.totalorder %s1096_s0, %s288_s9 }
 0x107   : > { %p1101_p10 = por %p1100_p6, %p1099_p13 }
 0x109   : > { %p1103_p0 = por %p1102_p8, %p1101_p10 }
 0x10b   : > { %p1104_p12 = pnand %p1103_p0, %p1097_p4 }
 0x10d   : > { %1107 = shalt.err (!%p1104_p12)  }
 0x10e   : > { %s1108_s24 = scalar_lea.vmem %s299_s17, 16  ;;  %p1113_p2 = scmp.lt.s32.totalorder %s299_s17, %s1348_s11 }
 0x10f   : > { %p1109_p9 = scmp.ne.s32.totalorder %s299_s17, %s1108_s24  ;;  %p1114_p1 = scmp.lt.s32.totalorder %s1381_s19, %s1108_s24 }
 0x111   : > { %p1115_p3 = por %p1114_p1, %p1113_p2 }
 0x113   : > { %p1116_p5 = pnand %p1115_p3, %p1109_p9 }
 0x115   : > { %1119 = shalt.err (!%p1116_p5)  }
 0x116   : > { %301 = dma.hbm_to_vmem [thread:$0]  %s288_s9, 16, %s299_s17, [#allocation3] }
 0x117   : > { %s127_s21 = scalar_lea.vmem [#allocation9], %s1343_s5 }
 0x118   : > { %1178 = dma.done.wait [#allocation3], 128 }
 0x119   : > { %1179 = vsyncadd [#allocation3], 4294967168  ;;  %s785_s28 = sshll.u32 %s1198_s25, 7  ;;  %s506_s12 = sshll.u32 %s127_s21, 4  ;;  %v486_v0 = vld [vmem:[#allocation2] sm:$0xff]  ;;  %v488_v1 = vld [vmem:[#allocation6] sm:$0xff]  ;;  %s1530_s12 = int_to_ptr.vmem [resolvable:$true] %s506_s12 }
 0x11a   : > { %v489_v2 = vadd.f32 %v488_v1, %v486_v0  ;;  %s1528_s11 = scalar_lea.hbm %s1580_s3, %s785_s28  ;;  %s1607_s5 = sand.u32 1, %s1190_s23  }
 0x11b   : > { %s492_s19 = scalar_lea.sflag [#allocation8], %s1607_s5  ;;  %s1120_s2 = scalar_lea.vmem %s1530_s12, 128 }
 0x11c   : > { %490 = vst [vmem:[%s127_s21] sm:$0xff] %v489_v2  ;;  %p1121_p7 = scmp.ne.s32.totalorder %s1530_s12, %s1120_s2  ;;  %p1608_p11 = scmp.ne.s32.totalorder %s1595_s4, 0 }
 0x11d   : > { %s1211_s25 = smov [#allocation9]  }
 0x11e   : > { %p1122_p4 = pnand %p1121_p7, %p1608_p11  ;;  %s1124_s7 = sshll.u32 %s1211_s25, 4  ;;  %s1125_s7 = int_to_ptr.vmem [resolvable:$false] %s1124_s7 }
 0x11f   : > { %s1126_s18 = scalar_lea.vmem %s1125_s7, 256  ;;  %p1127_p6 = scmp.lt.s32.totalorder %s1530_s12, %s1125_s7 }
 0x120   : > { %p1123_p13 = pneg %p1122_p4  ;;  %p1128_p10 = scmp.lt.s32.totalorder %s1126_s18, %s1120_s2 }
 0x122   : > { %p1129_p8 = por %p1128_p10, %p1127_p6 }
 0x124   : > { %p1130_p0 = pnand %p1129_p8, %p1123_p13 }
 0x126   : > { %1133 = shalt.err (!%p1130_p0)
}
 0x127   : > { %s1134_s14 = scalar_lea.hbm %s1528_s11, 128  ;;  %s1138_s17 = scalar_lea.hbm %s1580_s3, 256 }
 0x128   : > { %p1135_p12 = scmp.ne.s32.totalorder %s1528_s11, %s1134_s14  ;;  %p1139_p1 = scmp.lt.u32.totalorder %s1528_s11, %s1580_s3 }
 0x129   : > { %p1140_p3 = scmp.lt.u32.totalorder %s1138_s17, %s1134_s14  ;;  %p1142_p7 = scmp.lt.u32.totalorder %s1134_s14, %s1528_s11 }
 0x12a   : > { %p1136_p9 = pnand %p1135_p12, %p1608_p11 }
 0x12b   : > { %p1141_p5 = por %p1140_p3, %p1139_p1 }
 0x12c   : > { %p1137_p2 = pneg %p1136_p9 }
 0x12d   : > { %p1143_p4 = por %p1142_p7, %p1141_p5 }
 0x12f   : > { %p1144_p13 = pnand %p1143_p4, %p1137_p2 }
 0x131   : > { %1147 = shalt.err (!%p1144_p13)
}
 0x132   : > { %826 = dma.vmem_to_hbm [thread:$0]  (%p1608_p11), %s1530_s12, 128, %s1528_s11, %s492_s19  }
 0x133 PF: > { %p838_p6 = scmp.ge.s32.totalorder %s1206_s27, 2  ;;  %s518_s26 = sand.u32 1, %s1186_s22  }
 0x134   : > { %p1609_p10 = scmp.ne.s32.totalorder %s1596_s6, 0  ;;  %s519_s9 = scalar_lea.sflag [#allocation8], %s518_s26 }
 0x136   : > { %p833_p8 = pnand %p838_p6, %p1609_p10 }
 0x138   : > { %1181 = dma.done.wait (!%p833_p8), %s519_s9, 128  }
 0x139   : > { %1183 = vsyncadd (!%p833_p8), %s519_s9, 4294967168  ;;  %s21_s27 = sadd.s32 1, %s1206_s27   ;;  %s1610_s0 = sld [smem:[#allocation48_spill]] }
 0x13a   : > { %p18_p0 = scmp.ge.s32.totalorder %s21_s27, 4   ;;  %s1611_s24 = sld [smem:[#allocation51_spill]] }
 0x13b   : > { %s1612_s25 = sld [smem:[#allocation49_spill]]  ;;  %s1613_s26 = sld [smem:[#allocation50_spill]] }
 0x13c   : > { %s1614_s22 = smov %s1190_s23  ;;  %20 = sbr.rel (!%p18_p0) target bundleno = 17 (0x11), region = 171 }
 0x13f   : > { %s1615_s23 = smov %s1610_s0 }
 0x143   :  { %524 = vsyncpa [#allocation7], 1 }
 0x144   :  { %526 = vsyncpa [#allocation7 + $0x1], 1 }
 0x145   :  { %527 = vsyncpa [#allocation8], 1 }
 0x146   :  { %529 = vsyncpa [#allocation8 + $0x1], 1 }
 0x147   :  { %530 = vsyncmov [#allocation3] }
 0x14a   :  { %s531_s4 = vpop.sfrf %530 }
 0x14b   :  { %p788_p11 = scmp.ne.s32.totalorder %s531_s4, 0 }
 0x14d   :  { %535 = shalt.err (%p788_p11)  }
 0x14e   :  { %537 = vsyncmov [#allocation3 + $0x1] }
 0x151   :  { %s538_s6 = vpop.sfrf %537 }
 0x152   :  { %p789_p12 = scmp.ne.s32.totalorder %s538_s6, 0 }
 0x154   :  { %542 = shalt.err (%p789_p12)  }

</bundles_post_ra>
